<compile_context>
chip_gen: v7x
topology: tpu7x:2x2x1
jax: 0.10.0
libtpu: 0.0.40
codegen_flags: <defaults>
</compile_context>

<pallas_src>
import jax
import jax.numpy as jnp
from jax.experimental import pallas as pl
from jax.experimental.pallas import tpu as pltpu


PACK = 21  # logical rows packed per 126-lane row (21 * 6 = 126 <= 128 lanes)


def _packed_linear_hardswish_kernel(x_ref, w_ref, b_ref, o_ref):
    # x_ref:(tb, P*in)  w_ref:(P*in, P*out) block-diagonal  b_ref:(1, P*out)
    a1 = jax.lax.dot_general(
        x_ref[...], w_ref[...],
        dimension_numbers=(((1,), (0,)), ((), ())),
        preferred_element_type=jnp.float32,
        precision=jax.lax.Precision.HIGHEST,
    )
    a1 = a1 + b_ref[...]  # broadcasts over packed rows
    # hard-swish-like epilogue: a1 * clamp(a1 + 3, 0, 6) / 6  (single VPU pass)
    o_ref[...] = (a1 * jnp.clip(a1 + 3.0, 0.0, 6.0) * (1.0 / 6.0)).astype(o_ref.dtype)


def linear_hardswish(x, weight, bias, *, tile_rows=4096):
    """y = (x @ weight.T + bias) * clamp(. + 3, 0, 6) / 6.

    x: (B, in) f32, weight: (out, in) f32 (PyTorch Linear layout), bias: (out,).
    Rows are packed PACK-at-a-time into 126 lanes; the batch of packed rows is
    tiled with a parallel grid (double-buffered DMA, megacore sharding).
    """
    B, in_f = x.shape
    out_f = weight.shape[0]
    P = PACK

    # Pad batch to a multiple of the pack factor (only when needed).
    B_pad = ((B + P - 1) // P) * P
    if B_pad != B:
        x = jnp.pad(x, ((0, B_pad - B), (0, 0)))
    G = B_pad // P                      # number of packed rows
    kin, kout = P * in_f, P * out_f     # 126, 126

    xp = x.reshape(G, kin)              # free bitcast for contiguous row-major data
    # Block-diagonal weight: segment j of a packed row is multiplied by W^T.
    w_blk = jnp.kron(jnp.eye(P, dtype=weight.dtype), weight.T)   # (kin, kout)
    b_blk = jnp.tile(bias, P).reshape(1, kout)

    # Tile selection over packed rows: big enough to amortize the ~0.35us/step
    # grid overhead (>= ~1-2 MiB/step), but keep >= 2 steps when there is
    # enough work so both v7x TensorCores participate.
    if G > tile_rows:
        tb = tile_rows                                   # multiple of 8
    elif G >= 2048:
        tb = ((pl.cdiv(G, 2) + 7) // 8) * 8              # 2 steps, >= ~1 MiB each
    else:
        tb = G                                           # single step (tiny input)
    grid = (pl.cdiv(G, tb),)

    cost = pl.CostEstimate(
        flops=2 * G * kin * kout,
        transcendentals=0,
        bytes_accessed=(G * kin + G * kout + kin * kout + kout) * 4,
    )

    out_packed = pl.pallas_call(
        _packed_linear_hardswish_kernel,
        out_shape=jax.ShapeDtypeStruct((G, kout), jnp.float32),
        grid=grid,
        in_specs=[
            pl.BlockSpec((tb, kin), lambda i: (i, 0)),    # x: tiled over packed rows
            pl.BlockSpec((kin, kout), lambda i: (0, 0)),  # block-diag weight: resident
            pl.BlockSpec((1, kout), lambda i: (0, 0)),    # tiled bias: resident
        ],
        out_specs=pl.BlockSpec((tb, kout), lambda i: (i, 0)),
        compiler_params=pltpu.CompilerParams(
            dimension_semantics=("parallel",),
        ),
        cost_estimate=cost,
    )(xp, w_blk, b_blk)

    y = out_packed.reshape(B_pad, out_f)   # free unpack (row-major)
    if B_pad != B:
        y = y[:B]
    return y


if __name__ == "__main__":
    key = jax.random.PRNGKey(0)
    k_w, k_b, k_x1, k_x2, k_x3, k_x4 = jax.random.split(key, 6)

    # Deterministic synthetic parameters matching nn.Linear(6, 6)
    in_f, out_f = 6, 6
    bound = 1.0 / jnp.sqrt(in_f)
    weight = jax.random.uniform(k_w, (out_f, in_f), jnp.float32, -bound, bound)
    bias = jax.random.uniform(k_b, (out_f,), jnp.float32, -bound, bound)

    def ref_fn(x):
        a1 = x @ weight.T + bias
        return a1 * jnp.clip(a1 + 3.0, 0.0, 6.0) / 6.0

    # Case 1: the module's shape, l = torch.randn(1, 6)  (pads 1 -> 21 rows).
    x1 = jax.random.normal(k_x1, (1, in_f), jnp.float32)
    out1 = linear_hardswish(x1, weight, bias)
    jax.block_until_ready(out1)
    assert jnp.allclose(out1, ref_fn(x1), atol=1e-5, rtol=1e-5)

    # Case 2: batch not a multiple of 21 -> exercises the pad/slice path.
    x2 = jax.random.normal(k_x2, (1024, in_f), jnp.float32)
    out2 = linear_hardswish(x2, weight, bias)
    jax.block_until_ready(out2)
    assert jnp.allclose(out2, ref_fn(x2), atol=1e-5, rtol=1e-5)

    # Case 3: multiple of 21, forced small tile -> multi-step grid with a
    # partial (masked-writeback) edge block.
    x3 = jax.random.normal(k_x3, (21 * 200, in_f), jnp.float32)
    out3 = linear_hardswish(x3, weight, bias, tile_rows=64)
    jax.block_until_ready(out3)
    assert jnp.allclose(out3, ref_fn(x3), atol=1e-5, rtol=1e-5)

    # Case 4: large enough to trigger the ">=2 grid steps for megacore" split.
    x4 = jax.random.normal(k_x4, (21 * 2100, in_f), jnp.float32)
    out4 = linear_hardswish(x4, weight, bias)
    jax.block_until_ready(out4)
    assert jnp.allclose(out4, ref_fn(x4), atol=1e-5, rtol=1e-5)

    print("KERNEL_OK")
</pallas_src>

<mosaic_0001>
module attributes {stable_mosaic.version = 11 : i64} {
  func.func @_packed_linear_hardswish_kernel(%arg0: i32, %arg1: memref<1x126xf32, #tpu.memory_space<vmem>>, %arg2: memref<126x126xf32, #tpu.memory_space<vmem>>, %arg3: memref<1x126xf32, #tpu.memory_space<vmem>>, %arg4: memref<1x126xf32, #tpu.memory_space<vmem>>) attributes {dimension_semantics = [#tpu.dimension_semantics<parallel>], iteration_bounds = array<i64: 1>, scalar_prefetch = 0 : i64, scratch_operands = 0 : i64, tpu.core_type = #tpu.core_type<tc>, window_params = [{transform_indices = @transform_0, window_bounds = array<i64: 1, 126>}, {pipeline_mode = #tpu.pipeline_mode<synchronous>, transform_indices = @transform_1, window_bounds = array<i64: 126, 126>}, {pipeline_mode = #tpu.pipeline_mode<synchronous>, transform_indices = @transform_2, window_bounds = array<i64: 1, 126>}, {transform_indices = @transform_3, window_bounds = array<i64: 1, 126>}]} {
    %c0 = arith.constant 0 : index
    %c0_0 = arith.constant 0 : index
    %0 = vector.load %arg1[%c0, %c0_0] : memref<1x126xf32, #tpu.memory_space<vmem>>, vector<1x126xf32>
    %c0_1 = arith.constant 0 : index
    %c0_2 = arith.constant 0 : index
    %1 = vector.load %arg2[%c0_1, %c0_2] : memref<126x126xf32, #tpu.memory_space<vmem>>, vector<126x126xf32>
    %cst = arith.constant dense<0.000000e+00> : vector<1x126xf32>
    %2 = tpu.matmul %0, %1, %cst {dimension_numbers = #tpu.dot_dimension_numbers<[1], [0], [0], [1], [0, 0, 1, 1], [], []>, precision = #tpu.contract_precision<fp32>} : vector<1x126xf32>, vector<126x126xf32>, vector<1x126xf32> -> vector<1x126xf32>
    %c0_3 = arith.constant 0 : index
    %c0_4 = arith.constant 0 : index
    %3 = vector.load %arg3[%c0_3, %c0_4] : memref<1x126xf32, #tpu.memory_space<vmem>>, vector<1x126xf32>
    %4 = arith.addf %2, %3 : vector<1x126xf32>
    %cst_5 = arith.constant 3.000000e+00 : f32
    %5 = vector.broadcast %cst_5 : f32 to vector<1x126xf32>
    %6 = arith.addf %4, %5 : vector<1x126xf32>
    %cst_6 = arith.constant 0.000000e+00 : f32
    %cst_7 = arith.constant 6.000000e+00 : f32
    %7 = vector.broadcast %cst_6 : f32 to vector<1x126xf32>
    %8 = arith.maximumf %7, %6 : vector<1x126xf32>
    %9 = vector.broadcast %cst_7 : f32 to vector<1x126xf32>
    %10 = arith.minimumf %9, %8 : vector<1x126xf32>
    %11 = arith.mulf %4, %10 : vector<1x126xf32>
    %cst_8 = arith.constant 0.166666672 : f32
    %12 = vector.broadcast %cst_8 : f32 to vector<1x126xf32>
    %13 = arith.mulf %11, %12 : vector<1x126xf32>
    %c0_9 = arith.constant 0 : index
    %c0_10 = arith.constant 0 : index
    %14 = vector.load %arg4[%c0_9, %c0_10] : memref<1x126xf32, #tpu.memory_space<vmem>>, vector<1x126xf32>
    tpu.vector_store %arg4[%c0_9, %c0_10], %13 {strides = array<i32>} : memref<1x126xf32, #tpu.memory_space<vmem>>, vector<1x126xf32>,
    return
  }
  func.func @transform_0(%arg0: i32) -> (i32, i32) {
    %c0_i32 = arith.constant 0 : i32
    %c0_i32_0 = arith.constant 0 : i32
    return %arg0, %c0_i32 : i32, i32
  }
  func.func @transform_1(%arg0: i32) -> (i32, i32) {
    %c0_i32 = arith.constant 0 : i32
    %c0_i32_0 = arith.constant 0 : i32
    %c0_i32_1 = arith.constant 0 : i32
    return %c0_i32, %c0_i32_0 : i32, i32
  }
  func.func @transform_2(%arg0: i32) -> (i32, i32) {
    %c0_i32 = arith.constant 0 : i32
    %c0_i32_0 = arith.constant 0 : i32
    %c0_i32_1 = arith.constant 0 : i32
    return %c0_i32, %c0_i32_0 : i32, i32
  }
  func.func @transform_3(%arg0: i32) -> (i32, i32) {
    %c0_i32 = arith.constant 0 : i32
    %c0_i32_0 = arith.constant 0 : i32
    return %arg0, %c0_i32 : i32, i32
  }
}

</mosaic_0001>

<bundles_post_ra>
// kernel: tpu_custom_call.1
= control target key start
LH: loop header
LB: loop body
LE: loop exit
PB: predicated region body
PF: predicated region fallthrough
CT: control target
= control target key end

     0   :  { %8 = vsyncpa [#allocation3], 0  ;;  %s1614_s0 = inlined_call_operand.hbm [shape: f32[1,126], index: 0, kind: input, shape index: {}]   ;;  %s1615_s1 = inlined_call_operand.hbm [shape: f32[126,126], index: 1, kind: input, shape index: {}]   ;;  %s1616_s2 = inlined_call_operand.vmem [shape: f32[1,126], index: 2, kind: input, shape index: {}]   ;;  %s1617_s3 = inlined_call_operand.hbm [shape: f32[1,126], index: 3, kind: output, shape index: {}]  }
   0x1   :  { %9 = vsyncpa [#allocation6], 0 }
   0x2   :  { %10 = vsyncpa [#allocation4], 0  ;;  %s1277_s12 = smov [#allocation2]   ;;  %s1278_s14 = smov [#allocation5]  }
   0x3   :  { %s17_s13 = sshll.u32 %s1277_s12, 4  ;;  %s26_s15 = sshll.u32 %s1278_s14, 4  ;;  %s18_s13 = int_to_ptr.vmem [resolvable:$true] %s17_s13  ;;  %s1305_s15 = int_to_ptr.vmem [resolvable:$true] %s26_s15 }
   0x4   :  { %s1205_s18 = scalar_lea.hbm %s1614_s0, 16 }
   0x5   :  { %p1206_p0 = scmp.ne.s32.totalorder %s1614_s0, %s1205_s18  ;;  %p1209_p1 = scmp.lt.u32.totalorder %s1205_s18, %s1614_s0 }
   0x7   :  { %p1211_p2 = pnand %p1209_p1, %p1206_p0 }
   0x9   :  { %1214 = shalt.err (!%p1211_p2)
}
   0xa   :  { %s1215_s23 = scalar_lea.vmem %s18_s13, 16  ;;  %s1219_s24 = scalar_lea.vmem %s18_s13, 32 }
   0xb   :  { %p1216_p3 = scmp.ne.s32.totalorder %s18_s13, %s1215_s23  ;;  %p1220_p4 = scmp.lt.s32.totalorder %s18_s13, %s18_s13 }
   0xc   :  { %p1221_p5 = scmp.lt.s32.totalorder %s1219_s24, %s1215_s23 }
   0xe   :  { %p1222_p6 = por %p1221_p5, %p1220_p4 }
  0x10   :  { %p1223_p7 = pnand %p1222_p6, %p1216_p3 }
  0x12   :  { %1226 = shalt.err (!%p1223_p7)
}
  0x13   :  { %20 = dma.hbm_to_vmem [thread:$0]  %s1614_s0, 16, %s18_s13, [#allocation3]  }
  0x14   :  { %s1227_s29 = scalar_lea.hbm %s1615_s1, 2048 }
  0x15   :  { %p1228_p8 = scmp.ne.s32.totalorder %s1615_s1, %s1227_s29  ;;  %p1231_p9 = scmp.lt.u32.totalorder %s1227_s29, %s1615_s1 }
  0x17   :  { %p1233_p10 = pnand %p1231_p9, %p1228_p8 }
  0x19   :  { %1236 = shalt.err (!%p1233_p10)
}
  0x1a   :  { %s1237_s7 = scalar_lea.vmem %s1305_s15, 2048  ;;  %p1242_p12 = scmp.lt.s32.totalorder %s1305_s15, %s1305_s15 }
  0x1b   :  { %p1238_p11 = scmp.ne.s32.totalorder %s1305_s15, %s1237_s7  ;;  %p1243_p13 = scmp.lt.s32.totalorder %s1237_s7, %s1237_s7 }
  0x1d   :  { %p1244_p0 = por %p1243_p13, %p1242_p12 }
  0x1f   :  { %p1245_p1 = pnand %p1244_p0, %p1238_p11 }
  0x21   :  { %1248 = shalt.err (!%p1245_p1)
}
  0x22   :  { %s1279_s0 = smov 128   ;;  %s1280_s8 = smov 8  }
  0x23   :  { %32 = dma.hbm_to_vmem [thread:$0]  %s1615_s1, 2048, %s1305_s15, [#allocation6], %s1279_s0, %s1279_s0, %s1280_s8  }
  0x24   :  { %1271 = dma.done.wait [#allocation3], 16  }
  0x25   :  { %1272 = vsyncadd [#allocation3], 4294967280 }
  0x26   :  { %1273 = dma.done.wait [#allocation6], 2048  }
  0x27   :  { %1274 = vsyncadd [#allocation6], 4294965248  ;;  %v1281_v0 = vmov 0.0|0.0   ;;  %vm1282_vm0 = vmmov 0   ;;  %v1283_v1 = vmov 0.0   ;;  %v42_v2 = vld [vmem:[#allocation5] sm:$0xff] }
  0x28   :  { %1043 = vmatprep.subr.bf16.mxu1 %v1281_v0  ;;  %1115 = vmatprep.subr.bf16.mxu0 %v1281_v0  ;;  %v43_v3 = vld [vmem:[#allocation5 + $0x8] sm:$0xff]  ;;  %v44_v4 = vld [vmem:[#allocation5 + $0x10] sm:$0xff]  ;;  %v68_v5 = vand.u32 4294901760, %v42_v2  ;;  %v45_v7 = vld [vmem:[#allocation5 + $0x18] sm:$0xff]  ;;  %vm59_vm1 = vcmask 1031168   ;;  %vm63_vm2 = vcmask 1045504  }
  0x29   :  { %865 = vmatprep.mubr.msk.f32.mxu1 %vm1282_vm0, %v1283_v1  ;;  %970 = vmatprep.mubr.msk.f32.mxu0 %vm1282_vm0, %v1283_v1  ;;  %v71_v6 = vand.u32 4294901760, %v43_v3  ;;  %v74_v8 = vand.u32 4294901760, %v44_v4  ;;  %v77_v9 = vand.u32 4294901760, %v45_v7  ;;  %v46_v10 = vld [vmem:[#allocation5 + $0x20] sm:$0xff]  ;;  %v47_v11 = vld [vmem:[#allocation5 + $0x28] sm:$0xff]  ;;  %v1350_v16 = vld [vmem:[#allocation5 + $0x30] sm:$0xff] }
  0x2a   :  { %v80_v14 = vand.u32 4294901760, %v46_v10  ;;  %v83_v15 = vand.u32 4294901760, %v47_v11  ;;  %v1352_v17 = vld [vmem:[#allocation5 + $0x38] sm:$0xff]  ;;  %v86_v19 = vand.u32 4294901760, %v1350_v16  ;;  %v1362_v21 = vld [vmem:[#allocation5 + $0x40] sm:$0xff]  ;;  %v1364_v22 = vld [vmem:[#allocation5 + $0x48] sm:$0xff]  ;;  %v1378_v30 = vsub.f32 %v42_v2, %v68_v5 }
  0x2b   :  { %v1342_v12 = vpack.c.bf16 %v71_v6, %v68_v5  ;;  %v1346_v13 = vpack.c.bf16 %v77_v9, %v74_v8  ;;  %v89_v20 = vand.u32 4294901760, %v1352_v17  ;;  %v41_v23 = vld [vmem:[#allocation2] sm:$0x1]  ;;  %v92_v25 = vand.u32 4294901760, %v1362_v21  ;;  %v1374_v28 = vld [vmem:[#allocation5 + $0x50] sm:$0xff]  ;;  %v1394_v36 = vld [vmem:[#allocation5 + $0x60] sm:$0xff] }
  0x2c   :  { %v1356_v18 = vpack.c.bf16 %v83_v15, %v80_v14  ;;  %v95_v26 = vand.u32 4294901760, %v1364_v22  ;;  %v61_v27 = vsel %vm59_vm1, %v41_v23, 0  ;;  %v1376_v29 = vld [vmem:[#allocation5 + $0x58] sm:$0xff]  ;;  %v1382_v32 = vsub.f32 %v43_v3, %v71_v6  ;;  %v1396_v37 = vld [vmem:[#allocation5 + $0x68] sm:$0xff]  ;;  %v1417_v45 = vld [vmem:[#allocation5 + $0x70] sm:$0xff]  ;;  %s1284_s12 = smov [#allocation7]  }
  0x2d   :  { %1045 = vmatpush3.bf16.msra.mxu1 %v1342_v12  ;;  %1117 = vmatpush3.bf16.msra.mxu0 %v1342_v12  ;;  %v1368_v24 = vpack.c.bf16 %v89_v20, %v86_v19  ;;  %v1380_v31 = vand.u32 4294901760, %v61_v27  ;;  %v98_v34 = vand.u32 4294901760, %v1374_v28  ;;  %v101_v35 = vand.u32 4294901760, %v1376_v29  ;;  %v57_v38 = vld [vmem:[#allocation5 + $0x78] sm:$0x3f]  ;;  %s721_s13 = sshll.u32 %s1284_s12, 4  ;;  %s722_s13 = int_to_ptr.vmem [resolvable:$true] %s721_s13 }
  0x2e   :  { %1046 = vmatprep.subr.bf16.mxu1 %v1281_v0  ;;  %1118 = vmatprep.subr.bf16.mxu0 %v1281_v0  ;;  %v1390_v33 = vpack.c.bf16 %v95_v26, %v92_v25  ;;  %v1400_v39 = vsub.f32 %v44_v4, %v74_v8  ;;  %v1402_v40 = vsub.f32 %v45_v7, %v77_v9  ;;  %v104_v41 = vand.u32 4294901760, %v1394_v36  ;;  %s1249_s14 = scalar_lea.vmem %s722_s13, 16  ;;  %s1253_s15 = scalar_lea.vmem %s722_s13, 32 }
  0x2f   :  { %v107_v42 = vand.u32 4294901760, %v1396_v37  ;;  %v1407_v43 = vsub.f32 %v61_v27, %v1380_v31  ;;  %v1415_v44 = vpack.c.bf16 %v101_v35, %v98_v34  ;;  %v1419_v46 = vsel %vm63_vm2, %v57_v38, 0  ;;  %p1250_p2 = scmp.ne.s32.totalorder %s722_s13, %s1249_s14  ;;  %p1254_p3 = scmp.lt.s32.totalorder %s722_s13, %s722_s13 }
  0x30   :  { %v161_v47 = vand.u32 4294901760, %v1378_v30  ;;  %v168_v48 = vand.u32 4294901760, %v1382_v32  ;;  %v1425_v49 = vsub.f32 %v46_v10, %v80_v14  ;;  %v1427_v50 = vsub.f32 %v47_v11, %v83_v15  ;;  %p1255_p4 = scmp.lt.s32.totalorder %s1253_s15, %s1249_s14 }
  0x31   :  { %1048 = vmatpush3.bf16.msra.mxu1 %v1346_v13  ;;  %1120 = vmatpush3.bf16.msra.mxu0 %v1346_v13  ;;  %v1433_v51 = vpack.c.bf16 %v107_v42, %v104_v41  ;;  %v110_v52 = vand.u32 4294901760, %v1417_v45  ;;  %v113_v53 = vand.u32 4294901760, %v1419_v46  ;;  %v150_v54 = vand.u32 4294901760, %v1407_v43 }
  0x32   :  { %1049 = vmatprep.subr.bf16.mxu1 %v1281_v0  ;;  %1121 = vmatprep.subr.bf16.mxu0 %v1281_v0  ;;  %v162_v55 = vsub.f32 %v1378_v30, %v161_v47  ;;  %v169_v56 = vsub.f32 %v1382_v32, %v168_v48  ;;  %v175_v57 = vand.u32 4294901760, %v1400_v39  ;;  %v182_v58 = vand.u32 4294901760, %v1402_v40  ;;  %p1256_p5 = por %p1255_p4, %p1254_p3 }
  0x33   :  { %v1447_v59 = vsub.f32 %v1350_v16, %v86_v19  ;;  %v1450_v60 = vsub.f32 %v1352_v17, %v89_v20  ;;  %v1456_v61 = vpack.c.bf16 %v113_v53, %v110_v52  ;;  %v151_v62 = vsub.f32 %v1407_v43, %v150_v54 }
  0x34   :  { %v189_v63 = vand.u32 4294901760, %v1425_v49  ;;  %v196_v2 = vand.u32 4294901760, %v1427_v50  ;;  %v163_v3 = vand.u32 4294901760, %v162_v55  ;;  %v170_v4 = vand.u32 4294901760, %v169_v56  ;;  %p1257_p6 = pnand %p1256_p5, %p1250_p2 }
  0x35   :  { %1051 = vmatpush3.bf16.msra.mxu1 %v1356_v18  ;;  %1123 = vmatpush3.bf16.msra.mxu0 %v1356_v18  ;;  %v176_v5 = vsub.f32 %v1400_v39, %v175_v57  ;;  %v183_v6 = vsub.f32 %v1402_v40, %v182_v58  ;;  %v1470_v7 = vsub.f32 %v1362_v21, %v92_v25  ;;  %v152_v10 = vand.u32 4294901760, %v151_v62 }
  0x36   :  { %1052 = vmatprep.subr.bf16.mxu1 %v1281_v0  ;;  %1124 = vmatprep.subr.bf16.mxu0 %v1281_v0  ;;  %v1475_v8 = vsub.f32 %v1364_v22, %v95_v26  ;;  %v1140_v9 = vpack.c.bf16 %v168_v48, %v161_v47  ;;  %v190_v11 = vsub.f32 %v1425_v49, %v189_v63  ;;  %v203_v15 = vand.u32 4294901760, %v1447_v59 }
  0x37   :  { %v197_v14 = vsub.f32 %v1427_v50, %v196_v2  ;;  %v1068_v16 = vpack.c.bf16 %v170_v4, %v163_v3  ;;  %v177_v17 = vand.u32 4294901760, %v176_v5  ;;  %v184_v19 = vand.u32 4294901760, %v183_v6 }
  0x38   :  { %v210_v20 = vand.u32 4294901760, %v1450_v60  ;;  %v1488_v21 = vsub.f32 %v1374_v28, %v98_v34  ;;  %v1493_v22 = vsub.f32 %v1376_v29, %v101_v35  ;;  %v1143_v23 = vpack.c.bf16 %v182_v58, %v175_v57 }
  0x39   :  { %1054 = vmatpush3.bf16.msra.mxu1 %v1368_v24  ;;  %1126 = vmatpush3.bf16.msra.mxu0 %v1368_v24  ;;  %v191_v25 = vand.u32 4294901760, %v190_v11  ;;  %v198_v26 = vand.u32 4294901760, %v197_v14  ;;  %v204_v27 = vsub.f32 %v1447_v59, %v203_v15  ;;  %v1071_v38 = vpack.c.bf16 %v184_v19, %v177_v17 }
  0x3a   :  { %1055 = vmatprep.subr.bf16.mxu1 %v1281_v0  ;;  %1127 = vmatprep.subr.bf16.mxu0 %v1281_v0  ;;  %v211_v47 = vsub.f32 %v1450_v60, %v210_v20  ;;  %v217_v28 = vand.u32 4294901760, %v1470_v7  ;;  %v224_v34 = vand.u32 4294901760, %v1475_v8  ;;  %v1504_v29 = vsub.f32 %v1394_v36, %v104_v41 }
  0x3b   :  { %v1509_v35 = vsub.f32 %v1396_v37, %v107_v42  ;;  %v1074_v48 = vpack.c.bf16 %v198_v26, %v191_v25  ;;  %v231_v55 = vand.u32 4294901760, %v1488_v21  ;;  %v238_v56 = vand.u32 4294901760, %v1493_v22 }
  0x3c   :  { %v205_v36 = vand.u32 4294901760, %v204_v27  ;;  %v212_v41 = vand.u32 4294901760, %v211_v47  ;;  %v218_v57 = vsub.f32 %v1470_v7, %v217_v28  ;;  %v225_v37 = vsub.f32 %v1475_v8, %v224_v34 }
  0x3d   :  { %1057 = vmatpush3.bf16.msra.mxu1 %v1390_v33  ;;  %1129 = vmatpush3.bf16.msra.mxu0 %v1390_v33  ;;  %v1524_v42 = vsub.f32 %v1417_v45, %v110_v52  ;;  %v1529_v58 = vsub.f32 %v1419_v46, %v113_v53  ;;  %v1149_v62 = vpack.c.bf16 %v210_v20, %v203_v15  ;;  %v245_v3 = vand.u32 4294901760, %v1504_v29 }
  0x3e   :  { %1058 = vmatprep.subr.bf16.mxu1 %v1281_v0  ;;  %1130 = vmatprep.subr.bf16.mxu0 %v1281_v0  ;;  %v1077_v4 = vpack.c.bf16 %v212_v41, %v205_v36  ;;  %v219_v5 = vand.u32 4294901760, %v218_v57  ;;  %v226_v6 = vand.u32 4294901760, %v225_v37  ;;  %v252_v45 = vand.u32 4294901760, %v1509_v35 }
  0x3f   :  { %v1152_v46 = vpack.c.bf16 %v224_v34, %v217_v28  ;;  %v259_v14 = vand.u32 4294901760, %v1524_v42  ;;  %v266_v15 = vand.u32 4294901760, %v1529_v58  ;;  %vm713_vm3 = vcmask 1024000  }
  0x40   :  { %v253_v11 = vsub.f32 %v1509_v35, %v252_v45  ;;  %v1158_v27 = vpack.c.bf16 %v252_v45, %v245_v3 }
  0x41   :  { %1060 = vmatpush3.bf16.msra.mxu1 %v1415_v44  ;;  %1132 = vmatpush3.bf16.msra.mxu0 %v1415_v44  ;;  %v267_v25 = vsub.f32 %v1529_v58, %v266_v15  ;;  %v1161_v34 = vpack.c.bf16 %v266_v15, %v259_v14 }
  0x42   :  { %1061 = vmatprep.subr.bf16.mxu1 %v1281_v0  ;;  %1133 = vmatprep.subr.bf16.mxu0 %v1281_v0  ;;  %v254_v20 = vand.u32 4294901760, %v253_v11 }
  0x43   :  { %v268_v47 = vand.u32 4294901760, %v267_v25 }
  0x45   :  { %1063 = vmatpush3.bf16.msra.mxu1 %v1433_v51  ;;  %1135 = vmatpush3.bf16.msra.mxu0 %v1433_v51 }
  0x46   :  { %1064 = vmatprep.subr.bf16.mxu1 %v1281_v0  ;;  %1136 = vmatprep.subr.bf16.mxu0 %v1281_v0 }
  0x49   :  { %1066 = vmatpush3.bf16.msra.mxu1 %v1456_v61  ;;  %1138 = vmatpush3.bf16.msra.mxu0 %v1456_v61 }
  0x4a   :  { %1067 = vmatprep.subr.bf16.mxu1 %v1281_v0  ;;  %1139 = vmatprep.subr.bf16.mxu0 %v1281_v0 }
  0x4c   :  { %866 = vmatmul.mubr.f32.vlgmr.msra.gmra.mrb[0].mxu1 %v152_v10  ;;  %971 = vmatmul.mubr.f32.vlgmr.msra.gmra.mrb[0].mxu0 %v150_v54  ;;  %v1146_v54 = vpack.c.bf16 %v196_v2, %v189_v63  ;;  %v232_v63 = vsub.f32 %v1488_v21, %v231_v55  ;;  %v239_v2 = vsub.f32 %v1493_v22, %v238_v56 }
  0x4d   :  { %1069 = vmatpush3.bf16.msra.mxu1 %v1068_v16  ;;  %1141 = vmatpush3.bf16.msra.mxu0 %v1140_v9  ;;  %v246_v9 = vsub.f32 %v1504_v29, %v245_v3  ;;  %v1080_v10 = vpack.c.bf16 %v226_v6, %v219_v5  ;;  %v1155_v16 = vpack.c.bf16 %v238_v56, %v231_v55 }
  0x4e   :  { %1070 = vmatprep.subr.bf16.mxu1 %v1281_v0  ;;  %1142 = vmatprep.subr.bf16.mxu0 %v1281_v0  ;;  %v233_v52 = vand.u32 4294901760, %v232_v63  ;;  %v240_v53 = vand.u32 4294901760, %v239_v2 }
  0x4f   :  { %900 = vmatprep.mubr.msk.f32.mxu1 %vm1282_vm0, %v1283_v1  ;;  %1005 = vmatprep.mubr.msk.f32.mxu0 %vm1282_vm0, %v1283_v1  ;;  %v247_v17 = vand.u32 4294901760, %v246_v9 }
  0x50   :  { %v1083_v19 = vpack.c.bf16 %v240_v53, %v233_v52 }
  0x51   :  { %1072 = vmatpush3.bf16.msra.mxu1 %v1071_v38  ;;  %1144 = vmatpush3.bf16.msra.mxu0 %v1143_v23  ;;  %v260_v23 = vsub.f32 %v1524_v42, %v259_v14  ;;  %v1086_v26 = vpack.c.bf16 %v254_v20, %v247_v17 }
  0x52   :  { %1073 = vmatprep.subr.bf16.mxu1 %v1281_v0  ;;  %1145 = vmatprep.subr.bf16.mxu0 %v1281_v0 }
  0x53   :  { %v261_v38 = vand.u32 4294901760, %v260_v23 }
  0x55   :  { %1075 = vmatpush3.bf16.msra.mxu1 %v1074_v48  ;;  %1147 = vmatpush3.bf16.msra.mxu0 %v1146_v54  ;;  %v1089_v28 = vpack.c.bf16 %v268_v47, %v261_v38  ;;  %v1092_v48 = vpack.c.bf16 %v1382_v32, %v1378_v30  ;;  %v1095_v54 = vpack.c.bf16 %v1402_v40, %v1400_v39  ;;  %v58_v32 = vld [vmem:[%s1616_s2] sm:$0x1] }
  0x56   :  { %1076 = vmatprep.subr.bf16.mxu1 %v1281_v0  ;;  %1148 = vmatprep.subr.bf16.mxu0 %v1281_v0  ;;  %v1098_v30 = vpack.c.bf16 %v1427_v50, %v1425_v49 }
  0x59   :  { %1078 = vmatpush3.bf16.msra.mxu1 %v1077_v4  ;;  %1150 = vmatpush3.bf16.msra.mxu0 %v1149_v62 }
  0x5a   :  { %1079 = vmatprep.subr.bf16.mxu1 %v1281_v0  ;;  %1151 = vmatprep.subr.bf16.mxu0 %v1281_v0 }
  0x5d   :  { %1081 = vmatpush3.bf16.msra.mxu1 %v1080_v10  ;;  %1153 = vmatpush3.bf16.msra.mxu0 %v1152_v46 }
  0x5e   :  { %1082 = vmatprep.subr.bf16.mxu1 %v1281_v0  ;;  %1154 = vmatprep.subr.bf16.mxu0 %v1281_v0 }
  0x61   :  { %1084 = vmatpush3.bf16.msra.mxu1 %v1083_v19  ;;  %1156 = vmatpush3.bf16.msra.mxu0 %v1155_v16 }
  0x62   :  { %1085 = vmatprep.subr.bf16.mxu1 %v1281_v0  ;;  %1157 = vmatprep.subr.bf16.mxu0 %v1281_v0 }
  0x65   :  { %1087 = vmatpush3.bf16.msra.mxu1 %v1086_v26  ;;  %1159 = vmatpush3.bf16.msra.mxu0 %v1158_v27 }
  0x66   :  { %1088 = vmatprep.subr.bf16.mxu1 %v1281_v0  ;;  %1160 = vmatprep.subr.bf16.mxu0 %v1281_v0 }
  0x69   :  { %1090 = vmatpush3.bf16.msra.mxu1 %v1089_v28  ;;  %1162 = vmatpush3.bf16.msra.mxu0 %v1161_v34 }
  0x6a   :  { %1091 = vmatprep.subr.bf16.mxu1 %v1281_v0  ;;  %1163 = vmatprep.subr.bf16.mxu0 %v1281_v0 }
  0x6c   :  { %901 = vmatmul.mubr.f32.vlgmr.msra.gmra.mrb[0].mxu1 %v1380_v31  ;;  %1006 = vmatmul.mubr.f32.vlgmr.msra.gmra.mrb[0].mxu0 %v1380_v31 }
  0x6d   :  { %1093 = vmatpush3.bf16.msra.mxu1 %v1092_v48  ;;  %1165 = vmatpush3.bf16.msra.mxu0 %v1342_v12  ;;  %v1101_v12 = vpack.c.bf16 %v1450_v60, %v1447_v59 }
  0x6e   :  { %1094 = vmatprep.subr.bf16.mxu1 %v1281_v0  ;;  %1166 = vmatprep.subr.bf16.mxu0 %v1281_v0 }
  0x6f   :  { %935 = vmatprep.mubr.msk.f32.mxu1 %vm1282_vm0, %v1283_v1  ;;  %1040 = vmatprep.mubr.msk.f32.mxu0 %vm1282_vm0, %v1283_v1  ;;  %v1104_v1 = vpack.c.bf16 %v1475_v8, %v1470_v7 }
  0x71   :  { %1096 = vmatpush3.bf16.msra.mxu1 %v1095_v54  ;;  %1168 = vmatpush3.bf16.msra.mxu0 %v1346_v13  ;;  %v1107_v13 = vpack.c.bf16 %v1493_v22, %v1488_v21 }
  0x72   :  { %1097 = vmatprep.subr.bf16.mxu1 %v1281_v0  ;;  %1169 = vmatprep.subr.bf16.mxu0 %v1281_v0 }
  0x75   :  { %1099 = vmatpush3.bf16.msra.mxu1 %v1098_v30  ;;  %1171 = vmatpush3.bf16.msra.mxu0 %v1356_v18  ;;  %v1110_v18 = vpack.c.bf16 %v1509_v35, %v1504_v29 }
  0x76   :  { %1100 = vmatprep.subr.bf16.mxu1 %v1281_v0  ;;  %1172 = vmatprep.subr.bf16.mxu0 %v1281_v0 }
  0x79   :  { %1102 = vmatpush3.bf16.msra.mxu1 %v1101_v12  ;;  %1174 = vmatpush3.bf16.msra.mxu0 %v1368_v24  ;;  %v1113_v24 = vpack.c.bf16 %v1529_v58, %v1524_v42 }
  0x7a   :  { %1103 = vmatprep.subr.bf16.mxu1 %v1281_v0  ;;  %1175 = vmatprep.subr.bf16.mxu0 %v1281_v0 }
  0x7d   :  { %1105 = vmatpush3.bf16.msra.mxu1 %v1104_v1  ;;  %1177 = vmatpush3.bf16.msra.mxu0 %v1390_v33 }
  0x7e   :  { %1106 = vmatprep.subr.bf16.mxu1 %v1281_v0  ;;  %1178 = vmatprep.subr.bf16.mxu0 %v1281_v0 }
  0x81   :  { %1108 = vmatpush3.bf16.msra.mxu1 %v1107_v13  ;;  %1180 = vmatpush3.bf16.msra.mxu0 %v1415_v44 }
  0x82   :  { %1109 = vmatprep.subr.bf16.mxu1 %v1281_v0  ;;  %1181 = vmatprep.subr.bf16.mxu0 %v1281_v0 }
  0x85   :  { %1111 = vmatpush3.bf16.msra.mxu1 %v1110_v18  ;;  %1183 = vmatpush3.bf16.msra.mxu0 %v1433_v51 }
  0x86   :  { %1112 = vmatprep.subr.bf16.mxu1 %v1281_v0  ;;  %1184 = vmatprep.subr.bf16.mxu0 %v1281_v0 }
  0x89   :  { %1114 = vmatpush3.bf16.msra.mxu1 %v1113_v24  ;;  %1186 = vmatpush3.bf16.msra.mxu0 %v1456_v61 }
  0x8c   :  { %936 = vmatmul.mubr.f32.vlgmr.msra.gmra.mrb[0].mxu1 %v1407_v43  ;;  %1041 = vmatmul.mubr.f32.vlgmr.msra.gmra.mrb[0].mxu0 %v1380_v31 }
 0x15f   :  { %v409_v33 = vpop.f32.mrb[0].mxu1  ;;  %v704_v39 = vpop.f32.mrb[0].mxu0 }
 0x160   :  { %v1187_v40 = vadd.f32 %v409_v33, %v58_v32  ;;  %v937_v44 = vpop.f32.mrb[1].mxu1  ;;  %v1042_v49 = vpop.f32.mrb[1].mxu0 }
 0x162   :  { %v1188_v50 = vadd.f32 %v1187_v40, %v704_v39 }
 0x164   :  { %v708_v51 = vadd.f32 3.0, %v1188_v50 }
 0x166   :  { %v709_v59 = vmax.f32 %v708_v51, 0.0 }
 0x168   :  { %v710_v0 = vmin.f32 %v709_v59, 6.0 }
 0x16a   :  { %v711_v60 = vmul.f32 %v1188_v50, %v710_v0 }
 0x16c   :  { %v712_v43 = vmul.f32 0.16666667, %v711_v60 }
 0x16e   :  { %714 = vst.msk [vmem:[#allocation7] sm:$0x1] %vm713_vm3, %v712_v43 }
 0x16f   :  { %1260 = shalt.err (!%p1257_p6)
}
 0x170   :  { %s1261_s17 = scalar_lea.hbm %s1617_s3, 16 }
 0x171   :  { %p1262_p7 = scmp.ne.s32.totalorder %s1617_s3, %s1261_s17  ;;  %p1265_p8 = scmp.lt.u32.totalorder %s1261_s17, %s1617_s3 }
 0x173   :  { %p1267_p9 = pnand %p1265_p8, %p1262_p7 }
 0x175   :  { %1270 = shalt.err (!%p1267_p9)
}
 0x176   :  { %724 = dma.vmem_to_hbm [thread:$0]  %s722_s13, 16, %s1617_s3, [#allocation4]  }
 0x177   :  { %1275 = dma.done.wait [#allocation4], 16  }
 0x178   :  { %1276 = vsyncadd [#allocation4], 4294967280 }
 0x179   :  { %728 = vsyncpa [#allocation3], 1 }
 0x17a   :  { %729 = vsyncpa [#allocation6], 1 }
 0x17b   :  { %730 = vsyncpa [#allocation4], 1 }

</bundles_post_ra>
